<compile_context>
chip_gen: v6e
topology: v6e:2x2x1
jax: 0.10.0
libtpu: 0.0.40
codegen_flags: <defaults>
</compile_context>

<pallas_src>
import functools
import math

import jax
import jax.numpy as jnp
from jax import lax
from jax.experimental import pallas as pl
from jax.experimental.pallas import tpu as pltpu

LANE = 128
SUBLANE = 8
_MIN_GRID_STEPS = 4  # guarantee pipelining + megacore split on multi-tile tensors

# Activations with no transcendentals: always compute natively in input dtype.
_SIMPLE_ACTS = frozenset({"relu", "relu6", "h_swish", "h_sigmoid", "lrelu", "prelu"})
# EUP-friendly transcendentals that may compute natively in bf16/f16 on v6e/v7x.
_NATIVE_EUP_ACTS = frozenset({"sigmoid", "swish", "quick_gelu"})

_SUPPORTED = frozenset({
    "relu", "relu6", "h_swish", "h_sigmoid", "swish", "gelu",
    "quick_gelu", "elu", "mish", "sigmoid", "lrelu", "prelu",
})


@functools.lru_cache(maxsize=1)
def _chip_generation():
    """Best-effort TPU generation (7 for v7x, 6 for v6e, 5 for v5e/p, ...)."""
    try:
        kind = jax.devices()[0].device_kind.lower()
    except Exception:  # pragma: no cover - defensive
        return 6
    if "v7" in kind or "7x" in kind:
        return 7
    if "v6" in kind:
        return 6
    if "v5" in kind:
        return 5
    if "v4" in kind:
        return 4
    return 6


@functools.lru_cache(maxsize=1)
def _block_budget():
    """(target block bytes per buffer, vmem_limit_bytes) per chip generation."""
    gen = _chip_generation()
    if gen >= 7:
        # 3.2 TB/s HBM, 64 MiB physical VMEM: bigger blocks amortize per-step
        # overhead; in+out double-buffered footprint = 4 * 8 MiB = 32 MiB.
        return 8 << 20, 48 << 20
    if gen == 6:
        return 4 << 20, 40 << 20
    # v5e and older: ~2 MiB already sits at ~85% of the HBM roofline.
    return 2 << 20, 32 << 20


def _round_up(a, b):
    return -(-a // b) * b


def _cdiv(a, b):
    return -(-a // b)


def _apply_act(x, act_type, *, prelu_w=None, native_transcendental=False,
               gelu_approximate=False):
    """Elementwise activation. Simple acts (and, on v6e/v7x, bf16-friendly
    transcendentals) run in native dtype; the rest in f32 and cast back."""
    native = (
        act_type in _SIMPLE_ACTS
        or (native_transcendental and act_type in _NATIVE_EUP_ACTS)
        or (native_transcendental and gelu_approximate and act_type == "gelu")
    )
    xc = x if native else x.astype(jnp.float32)
    dt = xc.dtype
    zero = jnp.asarray(0.0, dt)

    if act_type == "relu":
        y = jnp.maximum(xc, zero)
    elif act_type == "relu6":
        y = jnp.clip(xc, zero, jnp.asarray(6.0, dt))
    elif act_type == "h_swish":
        y = xc * (jnp.clip(xc + jnp.asarray(3.0, dt), zero, jnp.asarray(6.0, dt))
                  * jnp.asarray(1.0 / 6.0, dt))
    elif act_type == "h_sigmoid":
        y = (jnp.clip(xc + jnp.asarray(3.0, dt), zero, jnp.asarray(6.0, dt))
             * jnp.asarray(1.0 / 6.0, dt))
    elif act_type == "swish":
        y = xc * jax.nn.sigmoid(xc)
    elif act_type == "gelu":
        if gelu_approximate:
            # tanh-approx gelu (1 EUP tanh + a few VALU ops) behind a flag.
            c0 = jnp.asarray(math.sqrt(2.0 / math.pi), dt)
            c1 = jnp.asarray(0.044715, dt)
            y = (jnp.asarray(0.5, dt) * xc
                 * (jnp.asarray(1.0, dt)
                    + jnp.tanh(c0 * (xc + c1 * xc * xc * xc))))
        else:
            # nn.GELU() default: exact (erf) formulation, kept in f32.
            inv_sqrt2 = jnp.asarray(1.0 / math.sqrt(2.0), dt)
            y = (jnp.asarray(0.5, dt) * xc
                 * (jnp.asarray(1.0, dt) + lax.erf(xc * inv_sqrt2)))
    elif act_type == "quick_gelu":
        y = xc * jax.nn.sigmoid(jnp.asarray(1.702, dt) * xc)
    elif act_type == "elu":
        # alpha = 1.0 (PyTorch default); expm1 for precision near 0. Kept f32.
        y = jnp.where(xc > zero, xc, jnp.expm1(xc))
    elif act_type == "mish":
        # x * tanh(softplus(x)) with a single exp (numerically stable):
        #   tanh(log(1 + e^x)) = ((1+e^x)^2 - 1) / ((1+e^x)^2 + 1),
        # evaluated with u = exp(-|x|) to avoid overflow for large x.
        u = jnp.exp(-jnp.abs(xc))
        pos = xc >= 0.0
        num = jnp.where(pos, 1.0 + 2.0 * u, u * (2.0 + u))
        den = (1.0 + u) * (1.0 + u) + jnp.where(pos, u * u, jnp.float32(1.0))
        y = xc * (num / den)
    elif act_type == "sigmoid":
        y = jax.nn.sigmoid(xc)
    elif act_type == "lrelu":
        # negative_slope = 0.01 (PyTorch default); select-free form.
        y = jnp.maximum(xc, zero) + jnp.asarray(0.01, dt) * jnp.minimum(xc, zero)
    elif act_type == "prelu":
        w = prelu_w.astype(dt)
        y = jnp.maximum(xc, zero) + w * jnp.minimum(xc, zero)
    else:
        raise NotImplementedError(f"{act_type} activation is not implemented.")
    return y.astype(x.dtype)


def _make_kernel(act_type, native_transcendental, gelu_approximate):
    if act_type == "prelu":
        def kernel(w_ref, x_ref, o_ref):
            w = w_ref[0]  # single hoisted SMEM scalar read per block
            o_ref[...] = _apply_act(
                x_ref[...], act_type, prelu_w=w,
                native_transcendental=native_transcendental,
                gelu_approximate=gelu_approximate)
    else:
        def kernel(x_ref, o_ref):
            o_ref[...] = _apply_act(
                x_ref[...], act_type,
                native_transcendental=native_transcendental,
                gelu_approximate=gelu_approximate)
    return kernel


def pallas_activation(x, act_type, prelu_weight=None, *, gelu_approximate=False):
    """Apply an elementwise activation via a Pallas TPU kernel.

    x may be any shape (e.g. NCHW). prelu_weight is a (1,)-shaped f32 array
    (PyTorch nn.PReLU default num_parameters=1) used only for act_type='prelu'.
    """
    if act_type not in _SUPPORTED:
        raise NotImplementedError(f"{act_type} activation is not implemented.")

    orig_shape = x.shape
    n = x.size
    if n == 0:
        return x

    itemsize = jnp.dtype(x.dtype).itemsize
    # Sublane packing: 8 rows f32, 16 rows bf16/f16, 32 rows int8/fp8.
    pack = max(SUBLANE, 32 // max(itemsize, 1))

    # Pad only to the next lane multiple (128 elems). The common NN case
    # (size % 128 == 0) takes the zero-copy path: flat reshape is free.
    # TODO(synk): a manual-DMA path could mask the <128-element tail in-kernel
    # and drop the pad+slice round trip entirely for odd sizes.
    if n % LANE:
        total = _round_up(n, LANE)
        xf = jnp.pad(x.reshape(-1), (0, total - n))
        padded = True
    else:
        total = n
        xf = x.reshape(-1)
        padded = False

    # Lane-dense slab: widest power-of-two column count dividing the total.
    cols = LANE
    for c in (1024, 512, 256):
        if total % c == 0:
            cols = c
            break
    nrows = total // cols
    x2d = xf.reshape(nrows, cols)

    block_bytes, vmem_limit = _block_budget()
    target_rows = max(pack, (block_bytes // (cols * itemsize)) // pack * pack)
    # Guarantee >= _MIN_GRID_STEPS grid steps on multi-tile tensors so the DMA
    # pipeline overlaps compute and (v7x) both TensorCores are used.
    desired_rows = _round_up(_cdiv(nrows, _MIN_GRID_STEPS), pack)
    tile_rows = max(pack, min(target_rows, desired_rows))
    if tile_rows >= nrows:
        tile_rows = nrows  # single block exactly matching the array (always legal)
    grid = (_cdiv(nrows, tile_rows),)
    data_spec = pl.BlockSpec((tile_rows, cols), lambda i: (i, 0))

    # bf16/f16-native compute for EUP-friendly transcendentals on v6e/v7x
    # (bf16 VALU + EUP); v5e and f32 inputs keep the f32 path.
    native_transcendental = (
        _chip_generation() >= 6
        and jnp.issubdtype(x.dtype, jnp.floating)
        and itemsize <= 2
    )

    in_specs = [data_spec]
    args = [x2d]
    if act_type == "prelu":
        if prelu_weight is None:
            prelu_weight = jnp.full((1,), 0.25, jnp.float32)  # PyTorch default init
        in_specs = [pl.BlockSpec(memory_space=pltpu.MemorySpace.SMEM)] + in_specs
        args = [jnp.asarray(prelu_weight, jnp.float32).reshape(1)] + args

    out = pl.pallas_call(
        _make_kernel(act_type, native_transcendental, gelu_approximate),
        out_shape=jax.ShapeDtypeStruct((nrows, cols), x.dtype),
        grid=grid,
        in_specs=in_specs,
        out_specs=data_spec,
        compiler_params=pltpu.CompilerParams(
            dimension_semantics=("parallel",),
            vmem_limit_bytes=vmem_limit,
        ),
    )(*args)

    out_flat = out.reshape(-1)
    if padded:
        out_flat = out_flat[:n]
    return out_flat.reshape(orig_shape)


class Activation:
    """JAX/Pallas mirror of torchtoolbox.nn.Activation (forward only).

    Note: `inplace=True` in the PyTorch module is a memory optimization with no
    JAX analogue (functional semantics)."""

    def __init__(self, act_type, auto_optimize=True, **kwargs):
        if act_type not in _SUPPORTED:
            raise NotImplementedError(f"{act_type} activation is not implemented.")
        self.act_type = act_type
        # Optional cheaper tanh-approx gelu (nn.GELU(approximate='tanh')).
        self.gelu_approximate = (
            kwargs.get("approximate", "none") == "tanh"
            or bool(kwargs.get("gelu_approximate", False))
        )
        # Deterministic parameter init (PReLU weight = 0.25, PyTorch default).
        # TODO(synk): per-channel PReLU (num_parameters>1) would need a
        # channel-aware BlockSpec instead of the flat (rows, C) layout.
        self.prelu_weight = (
            jnp.full((1,), 0.25, jnp.float32) if act_type == "prelu" else None
        )

    def __call__(self, x):
        return pallas_activation(x, self.act_type, self.prelu_weight,
                                 gelu_approximate=self.gelu_approximate)


def _reference(x, act_type, prelu_w):
    x = x.astype(jnp.float32)
    if act_type == "relu":
        return jnp.maximum(x, 0.0)
    if act_type == "relu6":
        return jnp.clip(x, 0.0, 6.0)
    if act_type == "h_swish":
        return x * jnp.clip(x + 3.0, 0.0, 6.0) / 6.0
    if act_type == "h_sigmoid":
        return jnp.clip(x + 3.0, 0.0, 6.0) / 6.0
    if act_type == "swish":
        return x * jax.nn.sigmoid(x)
    if act_type == "gelu":
        return jax.nn.gelu(x, approximate=False)
    if act_type == "quick_gelu":
        return x * jax.nn.sigmoid(1.702 * x)
    if act_type == "elu":
        return jnp.where(x > 0.0, x, jnp.expm1(x))
    if act_type == "mish":
        return x * jnp.tanh(jax.nn.softplus(x))
    if act_type == "sigmoid":
        return jax.nn.sigmoid(x)
    if act_type == "lrelu":
        return jnp.where(x >= 0.0, x, 0.01 * x)
    if act_type == "prelu":
        return jnp.where(x >= 0.0, x, prelu_w[0] * x)
    raise NotImplementedError(act_type)


if __name__ == "__main__":
    key = jax.random.PRNGKey(0)
    # NCHW, same convention as the PyTorch module's typical conv inputs.
    x = jax.random.normal(key, (2, 4, 16, 16), dtype=jnp.float32) * 3.0

    act_types = [
        "relu", "relu6", "h_swish", "h_sigmoid", "swish", "gelu",
        "quick_gelu", "elu", "mish", "sigmoid", "lrelu", "prelu",
    ]

    for act_type in act_types:
        mod = Activation(act_type)
        y = mod(x)
        jax.block_until_ready(y)
        ref = _reference(x, act_type, mod.prelu_weight)
        assert y.shape == x.shape and y.dtype == x.dtype
        assert jnp.allclose(y, ref, atol=1e-4, rtol=1e-4), f"mismatch for {act_type}"

    # Optional tanh-approx gelu behind a flag (default stays exact erf).
    y_ag = Activation("gelu", approximate="tanh")(x)
    jax.block_until_ready(y_ag)
    assert jnp.allclose(y_ag, jax.nn.gelu(x, approximate=True),
                        atol=1e-3, rtol=1e-3), "mismatch for approx gelu"

    # Ragged-tail path (size not a multiple of 128): pads only to next lane multiple.
    x_odd = jax.random.normal(jax.random.PRNGKey(1), (3, 5, 7), dtype=jnp.float32) * 3.0
    y_odd = Activation("swish")(x_odd)
    jax.block_until_ready(y_odd)
    assert jnp.allclose(y_odd, _reference(x_odd, "swish", None), atol=1e-4, rtol=1e-4)

    # Multi-step grid (>=4 steps forced for pipelining) with a ragged last block.
    x_big = jax.random.normal(jax.random.PRNGKey(2), (2, 4, 129, 128), dtype=jnp.float32) * 3.0
    y_big = Activation("mish")(x_big)
    jax.block_until_ready(y_big)
    assert jnp.allclose(y_big, _reference(x_big, "mish", None), atol=1e-4, rtol=1e-4)

    # bf16 path (native bf16 compute on v6e/v7x; f32 compute path on v5e/older).
    x_bf = (jax.random.normal(jax.random.PRNGKey(3), (2, 8, 32, 32),
                              dtype=jnp.float32) * 2.0).astype(jnp.bfloat16)
    for act_type in ("swish", "sigmoid", "relu6", "quick_gelu"):
        y_bf = Activation(act_type)(x_bf)
        jax.block_until_ready(y_bf)
        ref_bf = _reference(x_bf.astype(jnp.float32), act_type, None)
        assert y_bf.dtype == jnp.bfloat16
        assert jnp.allclose(y_bf.astype(jnp.float32), ref_bf,
                            atol=0.05, rtol=0.05), f"bf16 mismatch for {act_type}"

    print("KERNEL_OK")
</pallas_src>

<mosaic_0001>
module attributes {stable_mosaic.version = 11 : i64} {
  func.func @kernel(%arg0: i32, %arg1: memref<2x1024xf32, #tpu.memory_space<vmem>>, %arg2: memref<2x1024xf32, #tpu.memory_space<vmem>>) attributes {dimension_semantics = [#tpu.dimension_semantics<parallel>], iteration_bounds = array<i64: 1>, scalar_prefetch = 0 : i64, scratch_operands = 0 : i64, tpu.core_type = #tpu.core_type<tc>, window_params = [{transform_indices = @transform_0, window_bounds = array<i64: 2, 1024>}, {transform_indices = @transform_1, window_bounds = array<i64: 2, 1024>}]} {
    %c0 = arith.constant 0 : index
    %c0_0 = arith.constant 0 : index
    %0 = vector.load %arg1[%c0, %c0_0] : memref<2x1024xf32, #tpu.memory_space<vmem>>, vector<2x1024xf32>
    %cst = arith.constant 0.000000e+00 : f32
    %1 = vector.broadcast %cst : f32 to vector<2x1024xf32>
    %2 = arith.maximumf %0, %1 : vector<2x1024xf32>
    %c0_1 = arith.constant 0 : index
    %c0_2 = arith.constant 0 : index
    %3 = vector.load %arg2[%c0_1, %c0_2] : memref<2x1024xf32, #tpu.memory_space<vmem>>, vector<2x1024xf32>
    tpu.vector_store %arg2[%c0_1, %c0_2], %2 {strides = array<i32>} : memref<2x1024xf32, #tpu.memory_space<vmem>>, vector<2x1024xf32>,
    return
  }
  func.func @transform_0(%arg0: i32) -> (i32, i32) {
    %c0_i32 = arith.constant 0 : i32
    %c0_i32_0 = arith.constant 0 : i32
    return %arg0, %c0_i32 : i32, i32
  }
  func.func @transform_1(%arg0: i32) -> (i32, i32) {
    %c0_i32 = arith.constant 0 : i32
    %c0_i32_0 = arith.constant 0 : i32
    return %arg0, %c0_i32 : i32, i32
  }
}

</mosaic_0001>

<bundles_post_ra>
// kernel: tpu_custom_call.1
= control target key start
LH: loop header
LB: loop body
LE: loop exit
PB: predicated region body
PF: predicated region fallthrough
CT: control target
= control target key end

     0   :  { %6 = vsyncpa [#allocation3], 0  ;;  %s106_s0 = inlined_call_operand.hbm [shape: f32[2,1024], index: 0, kind: input, shape index: {}]   ;;  %s107_s1 = inlined_call_operand.hbm [shape: f32[2,1024], index: 1, kind: output, shape index: {}]  }
   0x1   :  { %7 = vsyncpa [#allocation4], 0  ;;  %s88_s6 = smov [#allocation2]  }
   0x2   :  { %s14_s7 = sshll.u32 %s88_s6, 4  ;;  %s15_s7 = int_to_ptr.vmem [resolvable:$true] %s14_s7 }
   0x3   :  { %s52_s8 = scalar_lea.vmem %s15_s7, 256  ;;  %p57_p1 = scmp.lt.s32.totalorder %s15_s7, %s15_s7 }
   0x4   :  { %p53_p0 = scmp.ne.s32.totalorder %s15_s7, %s52_s8  ;;  %p58_p2 = scmp.lt.s32.totalorder %s52_s8, %s52_s8 }
   0x6   :  { %p59_p3 = por %p58_p2, %p57_p1 }
   0x8   :  { %p60_p4 = pnand %p59_p3, %p53_p0 }
   0xa   :  { %63 = shalt.err (!%p60_p4)
}
   0xb   :  { %17 = dma.hbm_to_vmem [thread:$0]  %s106_s0, 256, %s15_s7, [#allocation3]  }
   0xc   :  { %84 = dma.done.wait [#allocation3], 256  }
   0xd   :  { %85 = vsyncadd [#allocation3], 4294967040  ;;  %s89_s11 = smov [#allocation5]   ;;  %v21_v0 = vld [vmem:[#allocation2] sm:$0xff]  ;;  %v22_v1 = vld [vmem:[#allocation2 + $0x8] sm:$0xff] }
   0xe   :  { %s33_s12 = sshll.u32 %s89_s11, 4  ;;  %v23_v2 = vmax.f32 %v21_v0, 0.0  ;;  %v24_v3 = vmax.f32 %v22_v1, 0.0  ;;  %s34_s12 = int_to_ptr.vmem [resolvable:$true] %s33_s12 }
   0xf   :  { %s64_s13 = scalar_lea.vmem %s34_s12, 256  ;;  %p69_p6 = scmp.lt.s32.totalorder %s34_s12, %s34_s12 }
  0x10   :  { %25 = vst [vmem:[#allocation5] sm:$0xff] %v23_v2  ;;  %26 = vst [vmem:[#allocation5 + $0x8] sm:$0xff] %v24_v3  ;;  %p65_p5 = scmp.ne.s32.totalorder %s34_s12, %s64_s13  ;;  %p70_p7 = scmp.lt.s32.totalorder %s64_s13, %s64_s13 }
  0x12   :  { %p71_p8 = por %p70_p7, %p69_p6 }
  0x14   :  { %p72_p9 = pnand %p71_p8, %p65_p5 }
  0x16   :  { %75 = shalt.err (!%p72_p9)
}
  0x17   :  { %36 = dma.vmem_to_hbm [thread:$0]  %s34_s12, 256, %s107_s1, [#allocation4]  }
  0x18   :  { %86 = dma.done.wait [#allocation4], 256  }
  0x19   :  { %87 = vsyncadd [#allocation4], 4294967040 }
  0x1a   :  { %40 = vsyncpa [#allocation3], 1 }
  0x1b   :  { %41 = vsyncpa [#allocation4], 1 }

</bundles_post_ra>
